<compile_context>
chip_gen: v7x
topology: tpu7x:2x2x1
jax: 0.10.0
libtpu: 0.0.40
codegen_flags: <defaults>
</compile_context>

<pallas_src>
import functools

import jax
import jax.numpy as jnp
from jax.experimental import pallas as pl
from jax.experimental.pallas import tpu as pltpu


def _completeness_kernel(picked_ref, out_ref, *, sample_split, n_keep_neg,
                         n_groups, lane_chunk):
    # picked_ref: (S, TG) f32 -- picked[s, g] = pred[g*S + s, label-1]
    # out_ref   : (1, 1, TG) f32 -- per-lane (per-group) partial loss sum
    s, tg = picked_ref.shape
    neg_size = s - sample_split
    n_chunks = tg // lane_chunk
    tile_base = pl.program_id(0) * tg

    def process_chunk(off):
        lane = jax.lax.broadcasted_iota(jnp.int32, (1, lane_chunk), 1)
        valid = (tile_base + off + lane) < n_groups           # (1, CH)

        chunk = picked_ref[:, pl.ds(off, lane_chunk)]         # (S, CH)
        partial = jnp.zeros((1, lane_chunk), jnp.float32)

        # ---- positive samples: hinge(1 - x), ohem_ratio = 1.0 -> keep all ----
        if sample_split > 0:
            pos_loss = jnp.maximum(0.0, 1.0 - chunk[:sample_split, :])
            partial += jnp.sum(pos_loss, axis=0, keepdims=True)

        # ---- negative samples: hinge(1 + x), per-group top-k (OHEM) ----
        if neg_size > 0 and n_keep_neg > 0:
            vals = jnp.maximum(0.0, 1.0 + chunk[sample_split:, :])   # >= 0
            sub_iota = jax.lax.broadcasted_iota(
                jnp.int32, (neg_size, lane_chunk), 0)
            neg_acc = jnp.zeros((1, lane_chunk), jnp.float32)

            def take_max(vals, neg_acc, mask_out):
                # one small sublane reduce per step; lane-parallel over groups
                row_max = jnp.max(vals, axis=0, keepdims=True)        # (1, CH)
                neg_acc = neg_acc + row_max
                if mask_out:
                    # remove exactly one (the first) max occurrence per lane;
                    # -1 sentinel is safe because hinge values are >= 0 and
                    # k <= neg_size.
                    is_max = vals == row_max
                    first = jnp.min(
                        jnp.where(is_max, sub_iota, jnp.int32(neg_size)),
                        axis=0, keepdims=True)
                    vals = jnp.where(sub_iota == first, jnp.float32(-1.0),
                                     vals)
                return vals, neg_acc

            if n_keep_neg <= 16:                 # static unroll (LLO visible)
                for it in range(n_keep_neg):
                    vals, neg_acc = take_max(vals, neg_acc,
                                             it + 1 < n_keep_neg)
            else:                                # fixed-size carries -> unroll
                vals, neg_acc = jax.lax.fori_loop(
                    0, n_keep_neg - 1,
                    lambda _, c: take_max(c[0], c[1], True),
                    (vals, neg_acc), unroll=True)
                _, neg_acc = take_max(vals, neg_acc, False)
            partial += neg_acc

        # zero padded lanes beyond the real group count
        partial = jnp.where(valid, partial, 0.0)
        out_ref[:, :, pl.ds(off, lane_chunk)] = partial.reshape(
            1, 1, lane_chunk)

    if n_chunks == 1:
        process_chunk(0)
    else:
        @pl.loop(0, n_chunks)
        def _(c):
            process_chunk(pl.multiple_of(c * lane_chunk, 128))


_TARGET_TG = 8192     # lanes per grid step (large tiles amortize step overhead)
_LANE_CHUNK = 512     # lanes per in-kernel compute chunk (bounds vreg pressure)


def completeness_loss(predicted_label, label, sample_split, sample_group_size,
                      ohem_ratio=0.17):
    """JAX/Pallas equivalent of CompletenessLoss.forward. Returns shape (1,) f32."""
    pred = jnp.asarray(predicted_label, jnp.float32)
    lab = jnp.asarray(label, jnp.int32)
    n, d = pred.shape
    assert n % sample_group_size == 0
    g = n // sample_group_size
    s = sample_group_size
    neg_size = s - sample_split

    # counts exactly as in the PyTorch module
    n_keep_neg = int(ohem_ratio * neg_size)                 # per-group OHEM keep
    positive_count = g * sample_split
    negative_count = int(g * neg_size * ohem_ratio)
    denom = float(positive_count + negative_count)

    # ---- wrapper-side class gather (cuts kernel HBM bytes by ~D) ----
    # picked[i] = pred[i, (label[i]-1) % D]; the mod matches PyTorch's
    # wrap-around pred[i, -1] for label == 0.  Select+sum over the tiny class
    # axis fuses into one pass over pred in XLA (no gather lowering needed).
    idx = jnp.mod(lab - 1, d)
    class_iota = jnp.arange(d, dtype=jnp.int32)[None, :]
    picked = jnp.sum(jnp.where(class_iota == idx[:, None], pred, 0.0), axis=1)

    # ---- lane-dense tiling: groups on the 128-lane axis ----
    g_lanes = pl.cdiv(g, 128) * 128
    if g_lanes <= _LANE_CHUNK:
        tg = g_lanes
    else:
        # Large tiles, but keep >= 2 grid tiles when possible so both of
        # v7x's TensorCores get work ("parallel" axis); the one extra step is
        # negligible on v5e/v6e at these tile sizes.
        half = (g_lanes // 2 // _LANE_CHUNK) * _LANE_CHUNK
        tg = min(_TARGET_TG, max(_LANE_CHUNK, half))
    g_pad = pl.cdiv(g, tg) * tg
    num_tiles = g_pad // tg
    lane_chunk = min(_LANE_CHUNK, tg)

    # Layout glue (wrapper side): only N f32 now (tiny vs the old N*D passes).
    picked_t = picked.reshape(g, s).T                        # (S, G)
    if g_pad > g:
        picked_t = jnp.pad(picked_t, ((0, 0), (0, g_pad - g)))

    kernel = functools.partial(
        _completeness_kernel,
        sample_split=sample_split,
        n_keep_neg=n_keep_neg,
        n_groups=g,
        lane_chunk=lane_chunk,
    )

    partials = pl.pallas_call(
        kernel,
        out_shape=jax.ShapeDtypeStruct((num_tiles, 1, tg), jnp.float32),
        grid=(num_tiles,),
        in_specs=[pl.BlockSpec((s, tg), lambda i: (0, i))],
        out_specs=pl.BlockSpec((1, 1, tg), lambda i: (i, 0, 0)),
        compiler_params=pltpu.CompilerParams(
            dimension_semantics=("parallel",)),
    )(picked_t)

    # tiny epilogue: reduce lane-dense per-tile partials + normalize
    return (jnp.sum(partials) / denom).reshape(1)


def _reference_loss(pred, lab, sample_split, sample_group_size, ohem_ratio=0.17):
    """Pure-JAX reference matching the PyTorch semantics (validation only)."""
    pred = jnp.asarray(pred, jnp.float32)
    lab = jnp.asarray(lab, jnp.int32)
    n, d = pred.shape
    g = n // sample_group_size
    picked = pred[jnp.arange(n), jnp.mod(lab - 1, d)].reshape(
        g, sample_group_size)
    pos_sum = jnp.maximum(0.0, 1.0 - picked[:, :sample_split]).sum()
    neg_size = sample_group_size - sample_split
    neg_loss = jnp.maximum(0.0, 1.0 + picked[:, sample_split:])
    k = int(ohem_ratio * neg_size)
    neg_sorted = -jnp.sort(-neg_loss, axis=-1)
    neg_sum = neg_sorted[:, :k].sum() if k > 0 else jnp.float32(0.0)
    denom = float(g * sample_split + int(g * neg_size * ohem_ratio))
    return ((pos_sum + neg_sum) / denom).reshape(1)


if __name__ == "__main__":
    key = jax.random.PRNGKey(0)
    k1, k2 = jax.random.split(key)

    # 1) Small shapes consistent with the module's forward.
    n_groups = 2
    sample_group_size = 8
    sample_split = 2
    predicted_dim = 4
    n = n_groups * sample_group_size

    predicted_label = jax.random.normal(k1, (n, predicted_dim), dtype=jnp.float32)
    label = jax.random.randint(k2, (n,), 1, predicted_dim + 1, dtype=jnp.int32)

    out = completeness_loss(predicted_label, label, sample_split,
                            sample_group_size, ohem_ratio=0.17)
    out = jax.block_until_ready(out)
    ref = _reference_loss(predicted_label, label, sample_split,
                          sample_group_size, ohem_ratio=0.17)
    assert jnp.allclose(out, ref, atol=1e-5, rtol=1e-5), (out, ref)

    # 2) Multi-tile blocking + lane padding.
    n_groups2 = 600
    n2 = n_groups2 * sample_group_size
    k3, k4 = jax.random.split(jax.random.PRNGKey(1))
    pred2 = jax.random.normal(k3, (n2, predicted_dim), dtype=jnp.float32)
    lab2 = jax.random.randint(k4, (n2,), 1, predicted_dim + 1, dtype=jnp.int32)
    out2 = jax.block_until_ready(
        completeness_loss(pred2, lab2, sample_split, sample_group_size))
    ref2 = _reference_loss(pred2, lab2, sample_split, sample_group_size)
    assert jnp.allclose(out2, ref2, atol=1e-5, rtol=1e-4), (out2, ref2)

    # 3) Larger G: exercises the in-kernel lane-chunk loop (pl.loop) path.
    n_groups3 = 3000
    n3 = n_groups3 * sample_group_size
    k5, k6 = jax.random.split(jax.random.PRNGKey(2))
    pred3 = jax.random.normal(k5, (n3, predicted_dim), dtype=jnp.float32)
    lab3 = jax.random.randint(k6, (n3,), 1, predicted_dim + 1, dtype=jnp.int32)
    out3 = jax.block_until_ready(
        completeness_loss(pred3, lab3, sample_split, sample_group_size))
    ref3 = _reference_loss(pred3, lab3, sample_split, sample_group_size)
    assert jnp.allclose(out3, ref3, atol=1e-5, rtol=1e-4), (out3, ref3)

    # 4) Larger group size / ratio: exercises the multi-step top-k (k=6) and
    #    the wrap-around label == 0 path.
    n_groups4 = 64
    group4, split4, ratio4 = 24, 6, 0.34
    n4 = n_groups4 * group4
    k7, k8 = jax.random.split(jax.random.PRNGKey(3))
    pred4 = jax.random.normal(k7, (n4, predicted_dim), dtype=jnp.float32)
    lab4 = jax.random.randint(k8, (n4,), 0, predicted_dim + 1, dtype=jnp.int32)
    out4 = jax.block_until_ready(
        completeness_loss(pred4, lab4, split4, group4, ohem_ratio=ratio4))
    ref4 = _reference_loss(pred4, lab4, split4, group4, ohem_ratio=ratio4)
    assert jnp.allclose(out4, ref4, atol=1e-5, rtol=1e-4), (out4, ref4)

    # TODO(synk): backward (OHEMHingeLoss.backward slope/index bookkeeping) is
    # autograd machinery, not part of the forward pass, and is not implemented.
    print("KERNEL_OK")
</pallas_src>

<mosaic_0001>
module attributes {stable_mosaic.version = 11 : i64} {
  func.func @_completeness_kernel(%arg0: i32, %arg1: memref<8x128xf32, #tpu.memory_space<vmem>>, %arg2: memref<1x1x128xf32, #tpu.memory_space<vmem>>) attributes {dimension_semantics = [#tpu.dimension_semantics<parallel>], iteration_bounds = array<i64: 1>, scalar_prefetch = 0 : i64, scratch_operands = 0 : i64, tpu.core_type = #tpu.core_type<tc>, window_params = [{transform_indices = @transform_0, window_bounds = array<i64: 8, 128>}, {transform_indices = @transform_1, window_bounds = array<i64: 1, 1, 128>}]} {
    %c128_i32 = arith.constant 128 : i32
    %0 = arith.muli %arg0, %c128_i32 : i32
    %1 = tpu.iota {dimensions = array<i32: 1>} : vector<1x128xi32>
    %c0_i32 = arith.constant 0 : i32
    %2 = arith.addi %0, %c0_i32 : i32
    %3 = vector.broadcast %2 : i32 to vector<1x128xi32>
    %4 = arith.addi %3, %1 : vector<1x128xi32>
    %c2_i32 = arith.constant 2 : i32
    %5 = vector.broadcast %c2_i32 : i32 to vector<1x128xi32>
    %6 = arith.cmpi slt, %4, %5 : vector<1x128xi32>
    %c0 = arith.constant 0 : index
    %c0_0 = arith.constant 0 : index
    %7 = vector.load %arg1[%c0, %c0_0] : memref<8x128xf32, #tpu.memory_space<vmem>>, vector<8x128xf32>
    %cst = arith.constant 0.000000e+00 : f32
    %8 = vector.broadcast %cst : f32 to vector<1x128xf32>
    %9 = vector.extract_strided_slice %7 {offsets = [0, 0], sizes = [2, 128], strides = [1, 1]} : vector<8x128xf32> to vector<2x128xf32>
    %cst_1 = arith.constant 1.000000e+00 : f32
    %10 = vector.broadcast %cst_1 : f32 to vector<2x128xf32>
    %11 = arith.subf %10, %9 : vector<2x128xf32>
    %cst_2 = arith.constant 0.000000e+00 : f32
    %12 = vector.broadcast %cst_2 : f32 to vector<2x128xf32>
    %13 = arith.maximumf %12, %11 : vector<2x128xf32>
    %cst_3 = arith.constant dense<0.000000e+00> : vector<128xf32>
    %14 = vector.multi_reduction <add>, %13, %cst_3 [0] : vector<2x128xf32> to vector<128xf32>
    %15 = vector.shape_cast %14 : vector<128xf32> to vector<1x128xf32>
    %16 = arith.addf %8, %15 : vector<1x128xf32>
    %17 = vector.extract_strided_slice %7 {offsets = [2, 0], sizes = [6, 128], strides = [1, 1]} : vector<8x128xf32> to vector<6x128xf32>
    %cst_4 = arith.constant 1.000000e+00 : f32
    %18 = vector.broadcast %cst_4 : f32 to vector<6x128xf32>
    %19 = arith.addf %18, %17 : vector<6x128xf32>
    %cst_5 = arith.constant 0.000000e+00 : f32
    %20 = vector.broadcast %cst_5 : f32 to vector<6x128xf32>
    %21 = arith.maximumf %20, %19 : vector<6x128xf32>
    %cst_6 = arith.constant 0.000000e+00 : f32
    %22 = vector.broadcast %cst_6 : f32 to vector<1x128xf32>
    %cst_7 = arith.constant dense<0xFF800000> : vector<128xf32>
    %23 = vector.multi_reduction <maximumf>, %21, %cst_7 [0] : vector<6x128xf32> to vector<128xf32>
    %24 = vector.shape_cast %23 : vector<128xf32> to vector<1x128xf32>
    %25 = arith.addf %22, %24 : vector<1x128xf32>
    %26 = arith.addf %16, %25 : vector<1x128xf32>
    %cst_8 = arith.constant 0.000000e+00 : f32
    %27 = vector.broadcast %cst_8 : f32 to vector<1x128xf32>
    %28 = arith.select %6, %26, %27 : vector<1x128xi1>, vector<1x128xf32>
    %29 = vector.shape_cast %28 : vector<1x128xf32> to vector<1x1x128xf32>
    %c0_9 = arith.constant 0 : index
    %c0_10 = arith.constant 0 : index
    %c0_11 = arith.constant 0 : index
    %30 = vector.load %arg2[%c0_9, %c0_10, %c0_11] : memref<1x1x128xf32, #tpu.memory_space<vmem>>, vector<1x1x128xf32>
    tpu.vector_store %arg2[%c0_9, %c0_10, %c0_11], %29 {strides = array<i32>} : memref<1x1x128xf32, #tpu.memory_space<vmem>>, vector<1x1x128xf32>,
    return
  }
  func.func @transform_0(%arg0: i32) -> (i32, i32) {
    %c0_i32 = arith.constant 0 : i32
    %c0_i32_0 = arith.constant 0 : i32
    return %c0_i32, %arg0 : i32, i32
  }
  func.func @transform_1(%arg0: i32) -> (i32, i32, i32) {
    %c0_i32 = arith.constant 0 : i32
    %c0_i32_0 = arith.constant 0 : i32
    %c0_i32_1 = arith.constant 0 : i32
    return %arg0, %c0_i32, %c0_i32_0 : i32, i32, i32
  }
}

</mosaic_0001>

<bundles_post_ra>
// kernel: tpu_custom_call.1
= control target key start
LH: loop header
LB: loop body
LE: loop exit
PB: predicated region body
PF: predicated region fallthrough
CT: control target
= control target key end

     0   :  { %6 = vsyncpa [#allocation3], 0  ;;  %s154_s0 = inlined_call_operand.hbm [shape: f32[8,128], index: 0, kind: input, shape index: {}]   ;;  %s155_s1 = inlined_call_operand.hbm [shape: f32[1,1,128], index: 1, kind: output, shape index: {}]  }
   0x1   :  { %7 = vsyncpa [#allocation4], 0  ;;  %s118_s6 = smov [#allocation2]   ;;  %s70_s10 = scalar_lea.hbm %s154_s0, 128 }
   0x2   :  { %s14_s7 = sshll.u32 %s118_s6, 4  ;;  %p71_p0 = scmp.ne.s32.totalorder %s154_s0, %s70_s10  ;;  %s15_s7 = int_to_ptr.vmem [resolvable:$true] %s14_s7 }
   0x3   :  { %p74_p1 = scmp.lt.u32.totalorder %s70_s10, %s154_s0 }
   0x5   :  { %p76_p2 = pnand %p74_p1, %p71_p0 }
   0x7   :  { %79 = shalt.err (!%p76_p2)
}
   0x8   :  { %s80_s15 = scalar_lea.vmem %s15_s7, 128  ;;  %p85_p4 = scmp.lt.s32.totalorder %s15_s7, %s15_s7 }
   0x9   :  { %p81_p3 = scmp.ne.s32.totalorder %s15_s7, %s80_s15  ;;  %p86_p5 = scmp.lt.s32.totalorder %s80_s15, %s80_s15 }
   0xb   :  { %p87_p6 = por %p86_p5, %p85_p4 }
   0xd   :  { %p88_p7 = pnand %p87_p6, %p81_p3 }
   0xf   :  { %91 = shalt.err (!%p88_p7)
}
  0x10   :  { %17 = dma.hbm_to_vmem [thread:$0]  %s154_s0, 128, %s15_s7, [#allocation3]  }
  0x11   :  { %114 = dma.done.wait [#allocation3], 128  }
  0x12   :  { %115 = vsyncadd [#allocation3], 4294967168  ;;  %v27_v0 = vld [vmem:[#allocation2] sm:$0xff]  ;;  %vm30_vm0 = vcmask 1041408   ;;  %vm41_vm1 = vcmask 1047554   ;;  %v22_v11 = vlaneseq  ;;  %s119_s0 = smov [#allocation5]  }
  0x13   :  { %v28_v1 = vsub.f32 1.0, %v27_v0  ;;  %v39_v2 = vadd.f32 1.0, %v27_v0  ;;  %s59_s18 = sshll.u32 %s119_s0, 4  ;;  %s60_s18 = int_to_ptr.vmem [resolvable:$true] %s59_s18 }
  0x14   :  { %v23_v16 = vand.u32 127, %v22_v11  ;;  %s92_s19 = scalar_lea.vmem %s60_s18, 16  ;;  %s96_s20 = scalar_lea.vmem %s60_s18, 32 }
  0x15   :  { %v29_v3 = vmax.f32 %v28_v1, 0.0  ;;  %v40_v4 = vmax.f32 %v39_v2, 0.0  ;;  %p93_p8 = scmp.ne.s32.totalorder %s60_s18, %s92_s19  ;;  %p97_p9 = scmp.lt.s32.totalorder %s60_s18, %s60_s18 }
  0x16   :  { %vm26_vm2 = vcmp.lt.s32.totalorder %v23_v16, 2  ;;  %p98_p10 = scmp.lt.s32.totalorder %s96_s20, %s92_s19 }
  0x17   :  { %v31_v5 = vsel %vm30_vm0, %v29_v3, 0.0  ;;  %v42_v6 = vsel %vm41_vm1, %v40_v4, -inf }
  0x18   :  { %v32_v7 = vrot.slane %v31_v5, 4  ;;  %v43_v8 = vrot.slane %v42_v6, 4  ;;  %p99_p11 = por %p98_p10, %p97_p9 }
  0x1a   :  { %v33_v9 = vadd.f32 %v32_v7, %v31_v5  ;;  %v44_v10 = vmax.f32 %v42_v6, %v43_v8  ;;  %p100_p12 = pnand %p99_p11, %p93_p8 }
  0x1c   :  { %v34_v12 = vrot.slane %v33_v9, 2  ;;  %v45_v13 = vrot.slane %v44_v10, 2 }
  0x1e   :  { %v35_v14 = vadd.f32 %v34_v12, %v33_v9  ;;  %v46_v15 = vmax.f32 %v44_v10, %v45_v13 }
  0x20   :  { %v36_v17 = vrot.slane %v35_v14, 1  ;;  %v47_v18 = vrot.slane %v46_v15, 1 }
  0x22   :  { %v37_v19 = vadd.f32 %v36_v17, %v35_v14  ;;  %v48_v20 = vmax.f32 %v46_v15, %v47_v18 }
  0x24   :  { %v50_v21 = vadd.f32 %v48_v20, %v37_v19 }
  0x26   :  { %v51_v22 = vsel %vm26_vm2, %v50_v21, 0.0 }
  0x27   :  { %52 = vst [vmem:[#allocation5] sm:$0x1] %v51_v22 }
  0x28   :  { %103 = shalt.err (!%p100_p12)
}
  0x29   :  { %s104_s23 = scalar_lea.hbm %s155_s1, 16 }
  0x2a   :  { %p105_p13 = scmp.ne.s32.totalorder %s155_s1, %s104_s23  ;;  %p108_p0 = scmp.lt.u32.totalorder %s104_s23, %s155_s1 }
  0x2c   :  { %p110_p1 = pnand %p108_p0, %p105_p13 }
  0x2e   :  { %113 = shalt.err (!%p110_p1)
}
  0x2f   :  { %62 = dma.vmem_to_hbm [thread:$0]  %s60_s18, 16, %s155_s1, [#allocation4]  }
  0x30   :  { %116 = dma.done.wait [#allocation4], 16  }
  0x31   :  { %117 = vsyncadd [#allocation4], 4294967280 }
  0x32   :  { %66 = vsyncpa [#allocation3], 1 }
  0x33   :  { %67 = vsyncpa [#allocation4], 1 }

</bundles_post_ra>
